<compile_context>
chip_gen: v7x
topology: tpu7x:2x2x1
jax: 0.10.0
libtpu: 0.0.40
codegen_flags: <defaults>
</compile_context>

<pallas_src>
import jax
import jax.numpy as jnp
from jax import lax
from jax.experimental import pallas as pl
from jax.experimental.pallas import tpu as pltpu


def _smiles_embedding_kernel(seq_ref, pos_ref, mask_ref, adj_ref,
                             table_ref, wh_ref, wa_ref, bias_ref,
                             out_ref):
    """One grid step processes a block of `Bt` batch elements.

    seq_ref  : (Bt*L, 1) int32   token indices, flattened over (batch, pos)
    pos_ref  : (Bt*L, 1) int32   position indices, pre-shifted by +vocab_size
    mask_ref : (Bt, L, 1) f32    adjacency mask
    adj_ref  : (Bt, L, L) f32    adjacency matrices
    table_ref: (Cpad, E)  f32    fused [token_table ; position_table ; zero-pad]
    wh_ref   : (L, E)    f32     Adjacency_embedding.weight_h
    wa_ref   : (L, 1)    f32     Adjacency_embedding.weight_a
    bias_ref : (1, E)    f32     Adjacency_embedding.bias
    out_ref  : (Bt, L, E) f32
    """
    bt, L, E = out_ref.shape
    rows = seq_ref.shape[0]          # Bt * L
    C = table_ref.shape[0]           # padded V + L (multiple of 128)

    # ---- token + position embedding as ONE fused one-hot @ table matmul ----
    seq = seq_ref[...]                                            # (rows, 1)
    pos = pos_ref[...]                                            # (rows, 1)
    col = lax.broadcasted_iota(jnp.int32, (rows, C), 1)
    onehot = ((seq == col) | (pos == col)).astype(jnp.float32)    # (rows, C)
    emb = jnp.dot(onehot, table_ref[...],
                  preferred_element_type=jnp.float32)             # (rows, E)
    emb = emb.reshape(bt, L, E)      # split leading dim only; lane dim unchanged

    # ---- Adjacency_embedding: out[b,e] = sum_ij wa[i] A[b,i,j] Wh[j,e] + b[e]
    # Contract with weight_a FIRST via VPU multiply + sublane reduce (keeps the
    # 1-row contraction off the MXU), then one batched (Bt,L)@(L,E) MXU matmul.
    adj = adj_ref[...]                                            # (Bt, L, L)
    wa = wa_ref[...]                                              # (L, 1)
    tmp = jnp.sum(adj * wa, axis=1)                               # (Bt, L)
    adj_out = jnp.dot(tmp, wh_ref[...],
                      preferred_element_type=jnp.float32)         # (Bt, E)
    adj_out = adj_out + bias_ref[...]                             # (Bt, E)

    # ---- combine: x = (tok + pos) + mask * adj_out (broadcast over positions)
    out_ref[...] = emb + mask_ref[...] * adj_out[:, None, :]


def _pick_batch_block(batch, requested):
    """Largest divisor of `batch` that is <= requested, preferring >=2 grid steps."""
    bt = max(1, min(requested, batch))
    while batch % bt:
        bt -= 1
    if batch // bt < 2 and bt > 1:          # give both v7x TensorCores work
        for cand in range(bt - 1, 0, -1):
            if batch % cand == 0 and batch // cand >= 2:
                return cand
    return bt


def smiles_embedding(sequence, pos_num, adj_mask, adj_mat,
                     token_table, position_table, weight_h, weight_a, bias,
                     *, batch_block=8):
    """Pallas TPU implementation of Smiles_embedding.forward (adj=True path)."""
    B, L = sequence.shape
    V, E = token_table.shape
    M = position_table.shape[0]
    assert L == M, "sequence length must equal max_len"
    assert weight_h.shape == (M, E) and weight_a.shape == (M,)

    bt = _pick_batch_block(B, batch_block)
    grid = (B // bt,)

    # Fused [token ; position] table: position indices are shifted by +V so one
    # one-hot / one matmul performs both gathers.  Pad the row (contraction)
    # dim to a multiple of 128 so the one-hot compares and the MXU contraction
    # are lane-dense; padded rows are zero and never selected.
    fused_table = jnp.concatenate(
        [token_table.astype(jnp.float32), position_table.astype(jnp.float32)],
        axis=0)
    C = V + M
    C_pad = ((C + 127) // 128) * 128
    if C_pad != C:
        fused_table = jnp.concatenate(
            [fused_table, jnp.zeros((C_pad - C, E), jnp.float32)], axis=0)

    seq2 = sequence.astype(jnp.int32).reshape(B * L, 1)
    pos2 = (pos_num.astype(jnp.int32) + V).reshape(B * L, 1)
    mask3 = adj_mask.astype(jnp.float32).reshape(B, L, 1)
    adj_f = adj_mat.astype(jnp.float32)
    wh = weight_h.astype(jnp.float32)
    wa2 = weight_a.astype(jnp.float32).reshape(M, 1)
    bias2 = bias.astype(jnp.float32).reshape(1, E)

    # TODO(synk): for production-sized vocabularies replace the one-hot gather
    # with a scalar-prefetch / DMA row gather; the one-hot path is only meant
    # for small V (SMILES vocab is a few tens of tokens).
    out = pl.pallas_call(
        _smiles_embedding_kernel,
        out_shape=jax.ShapeDtypeStruct((B, L, E), jnp.float32),
        grid=grid,
        in_specs=[
            pl.BlockSpec((bt * L, 1), lambda g: (g, 0)),      # token indices
            pl.BlockSpec((bt * L, 1), lambda g: (g, 0)),      # shifted position indices
            pl.BlockSpec((bt, L, 1), lambda g: (g, 0, 0)),    # adjacency mask
            pl.BlockSpec((bt, L, L), lambda g: (g, 0, 0)),    # adjacency matrices
            pl.BlockSpec((C_pad, E), lambda g: (0, 0)),       # fused embedding table (const)
            pl.BlockSpec((M, E), lambda g: (0, 0)),           # weight_h (const)
            pl.BlockSpec((M, 1), lambda g: (0, 0)),           # weight_a (const)
            pl.BlockSpec((1, E), lambda g: (0, 0)),           # bias (const)
        ],
        out_specs=pl.BlockSpec((bt, L, E), lambda g: (g, 0, 0)),
        compiler_params=pltpu.CompilerParams(dimension_semantics=("parallel",)),
    )(seq2, pos2, mask3, adj_f, fused_table, wh, wa2, bias2)
    return out


def reference(sequence, pos_num, adj_mask, adj_mat,
              token_table, position_table, weight_h, weight_a, bias):
    tok = token_table[sequence]                        # (B, L, E)
    pos = position_table[pos_num]                      # (B, L, E)
    a_w = jnp.einsum('bij,je->bie', adj_mat, weight_h)
    adj_out = jnp.einsum('bie,i->be', a_w, weight_a) + bias
    return tok + pos + adj_mask[..., None] * adj_out[:, None, :]


if __name__ == "__main__":
    # Small shapes consistent with the module (E chosen as 128 so the output
    # store is lane-dense; B=8 with Bt=4 gives a 2-step grid).
    B, L, V, E = 8, 16, 40, 128
    key = jax.random.PRNGKey(0)
    k_tok, k_pos, k_wh, k_wa, k_b, k_seq, k_mask, k_adj = jax.random.split(key, 8)

    token_table = jax.random.normal(k_tok, (V, E), jnp.float32)
    token_table = token_table.at[0].set(0.0)       # padding_idx=0 row is zero
    position_table = jax.random.normal(k_pos, (L, E), jnp.float32)
    stdv = 1.0 / (E ** 0.5)
    stdv2 = 1.0 / (L ** 0.5)
    weight_h = jax.random.uniform(k_wh, (L, E), jnp.float32, -stdv, stdv)
    weight_a = jax.random.uniform(k_wa, (L,), jnp.float32, -stdv2, stdv2)
    bias = jax.random.uniform(k_b, (E,), jnp.float32, -stdv, stdv)

    sequence = jax.random.randint(k_seq, (B, L), 0, V, jnp.int32)
    pos_num = jnp.tile(jnp.arange(L, dtype=jnp.int32)[None, :], (B, 1))
    adj_mask = (jax.random.uniform(k_mask, (B, L)) > 0.3).astype(jnp.float32)
    adj_mat = jax.random.normal(k_adj, (B, L, L), jnp.float32)

    out = smiles_embedding(sequence, pos_num, adj_mask, adj_mat,
                           token_table, position_table, weight_h, weight_a, bias)
    out = jax.block_until_ready(out)

    ref = reference(sequence, pos_num, adj_mask, adj_mat,
                    token_table, position_table, weight_h, weight_a, bias)
    if not jnp.allclose(out, ref, atol=1e-4, rtol=1e-4):
        raise AssertionError("Pallas kernel output does not match reference")

    print("KERNEL_OK")
</pallas_src>

<mosaic_0001>
module attributes {stable_mosaic.version = 11 : i64} {
  func.func @_smiles_embedding_kernel(%arg0: i32, %arg1: memref<64x1xi32, #tpu.memory_space<vmem>>, %arg2: memref<64x1xi32, #tpu.memory_space<vmem>>, %arg3: memref<4x16x1xf32, #tpu.memory_space<vmem>>, %arg4: memref<4x16x16xf32, #tpu.memory_space<vmem>>, %arg5: memref<128x128xf32, #tpu.memory_space<vmem>>, %arg6: memref<16x128xf32, #tpu.memory_space<vmem>>, %arg7: memref<16x1xf32, #tpu.memory_space<vmem>>, %arg8: memref<1x128xf32, #tpu.memory_space<vmem>>, %arg9: memref<4x16x128xf32, #tpu.memory_space<vmem>>) attributes {dimension_semantics = [#tpu.dimension_semantics<parallel>], iteration_bounds = array<i64: 2>, scalar_prefetch = 0 : i64, scratch_operands = 0 : i64, tpu.core_type = #tpu.core_type<tc>, window_params = [{transform_indices = @transform_0, window_bounds = array<i64: 64, 1>}, {transform_indices = @transform_1, window_bounds = array<i64: 64, 1>}, {transform_indices = @transform_2, window_bounds = array<i64: 4, 16, 1>}, {transform_indices = @transform_3, window_bounds = array<i64: 4, 16, 16>}, {pipeline_mode = #tpu.pipeline_mode<synchronous>, transform_indices = @transform_4, window_bounds = array<i64: 128, 128>}, {pipeline_mode = #tpu.pipeline_mode<synchronous>, transform_indices = @transform_5, window_bounds = array<i64: 16, 128>}, {pipeline_mode = #tpu.pipeline_mode<synchronous>, transform_indices = @transform_6, window_bounds = array<i64: 16, 1>}, {pipeline_mode = #tpu.pipeline_mode<synchronous>, transform_indices = @transform_7, window_bounds = array<i64: 1, 128>}, {transform_indices = @transform_8, window_bounds = array<i64: 4, 16, 128>}]} {
    %c0 = arith.constant 0 : index
    %c0_0 = arith.constant 0 : index
    %0 = vector.load %arg1[%c0, %c0_0] : memref<64x1xi32, #tpu.memory_space<vmem>>, vector<64x1xi32>
    %c0_1 = arith.constant 0 : index
    %c0_2 = arith.constant 0 : index
    %1 = vector.load %arg2[%c0_1, %c0_2] : memref<64x1xi32, #tpu.memory_space<vmem>>, vector<64x1xi32>
    %2 = tpu.iota {dimensions = array<i32: 1>} : vector<64x128xi32>
    %3 = vector.broadcast %0 : vector<64x1xi32> to vector<64x128xi32>
    %4 = arith.cmpi eq, %3, %2 : vector<64x128xi32>
    %5 = vector.broadcast %1 : vector<64x1xi32> to vector<64x128xi32>
    %6 = arith.cmpi eq, %5, %2 : vector<64x128xi32>
    %7 = arith.ori %4, %6 : vector<64x128xi1>
    %8 = arith.extui %7 : vector<64x128xi1> to vector<64x128xi32>
    %9 = arith.sitofp %8 : vector<64x128xi32> to vector<64x128xf32>
    %c0_3 = arith.constant 0 : index
    %c0_4 = arith.constant 0 : index
    %10 = vector.load %arg5[%c0_3, %c0_4] : memref<128x128xf32, #tpu.memory_space<vmem>>, vector<128x128xf32>
    %cst = arith.constant dense<0.000000e+00> : vector<64x128xf32>
    %11 = tpu.matmul %9, %10, %cst {dimension_numbers = #tpu.dot_dimension_numbers<[1], [0], [0], [1], [0, 0, 1, 1], [], []>} : vector<64x128xf32>, vector<128x128xf32>, vector<64x128xf32> -> vector<64x128xf32>
    %12 = vector.shape_cast %11 : vector<64x128xf32> to vector<4x16x128xf32>
    %c0_5 = arith.constant 0 : index
    %c0_6 = arith.constant 0 : index
    %c0_7 = arith.constant 0 : index
    %13 = vector.load %arg4[%c0_5, %c0_6, %c0_7] : memref<4x16x16xf32, #tpu.memory_space<vmem>>, vector<4x16x16xf32>
    %c0_8 = arith.constant 0 : index
    %c0_9 = arith.constant 0 : index
    %14 = vector.load %arg7[%c0_8, %c0_9] : memref<16x1xf32, #tpu.memory_space<vmem>>, vector<16x1xf32>
    %15 = vector.shape_cast %14 : vector<16x1xf32> to vector<1x16x1xf32>
    %16 = vector.broadcast %15 : vector<1x16x1xf32> to vector<4x16x16xf32>
    %17 = arith.mulf %13, %16 : vector<4x16x16xf32>
    %cst_10 = arith.constant dense<0.000000e+00> : vector<4x16xf32>
    %18 = vector.multi_reduction <add>, %17, %cst_10 [1] : vector<4x16x16xf32> to vector<4x16xf32>
    %c0_11 = arith.constant 0 : index
    %c0_12 = arith.constant 0 : index
    %19 = vector.load %arg6[%c0_11, %c0_12] : memref<16x128xf32, #tpu.memory_space<vmem>>, vector<16x128xf32>
    %cst_13 = arith.constant dense<0.000000e+00> : vector<4x128xf32>
    %20 = tpu.matmul %18, %19, %cst_13 {dimension_numbers = #tpu.dot_dimension_numbers<[1], [0], [0], [1], [0, 0, 1, 1], [], []>} : vector<4x16xf32>, vector<16x128xf32>, vector<4x128xf32> -> vector<4x128xf32>
    %c0_14 = arith.constant 0 : index
    %c0_15 = arith.constant 0 : index
    %21 = vector.load %arg8[%c0_14, %c0_15] : memref<1x128xf32, #tpu.memory_space<vmem>>, vector<1x128xf32>
    %22 = vector.broadcast %21 : vector<1x128xf32> to vector<4x128xf32>
    %23 = arith.addf %20, %22 : vector<4x128xf32>
    %c0_16 = arith.constant 0 : index
    %c0_17 = arith.constant 0 : index
    %c0_18 = arith.constant 0 : index
    %24 = vector.load %arg3[%c0_16, %c0_17, %c0_18] : memref<4x16x1xf32, #tpu.memory_space<vmem>>, vector<4x16x1xf32>
    %25 = vector.shape_cast %23 : vector<4x128xf32> to vector<4x1x128xf32>
    %26 = vector.broadcast %24 : vector<4x16x1xf32> to vector<4x16x128xf32>
    %27 = vector.broadcast %25 : vector<4x1x128xf32> to vector<4x16x128xf32>
    %28 = arith.mulf %26, %27 : vector<4x16x128xf32>
    %29 = arith.addf %12, %28 : vector<4x16x128xf32>
    %c0_19 = arith.constant 0 : index
    %c0_20 = arith.constant 0 : index
    %c0_21 = arith.constant 0 : index
    %30 = vector.load %arg9[%c0_19, %c0_20, %c0_21] : memref<4x16x128xf32, #tpu.memory_space<vmem>>, vector<4x16x128xf32>
    tpu.vector_store %arg9[%c0_19, %c0_20, %c0_21], %29 {strides = array<i32>} : memref<4x16x128xf32, #tpu.memory_space<vmem>>, vector<4x16x128xf32>,
    return
  }
  func.func @transform_0(%arg0: i32) -> (i32, i32) {
    %c0_i32 = arith.constant 0 : i32
    %c0_i32_0 = arith.constant 0 : i32
    return %arg0, %c0_i32 : i32, i32
  }
  func.func @transform_1(%arg0: i32) -> (i32, i32) {
    %c0_i32 = arith.constant 0 : i32
    %c0_i32_0 = arith.constant 0 : i32
    return %arg0, %c0_i32 : i32, i32
  }
  func.func @transform_2(%arg0: i32) -> (i32, i32, i32) {
    %c0_i32 = arith.constant 0 : i32
    %c0_i32_0 = arith.constant 0 : i32
    %c0_i32_1 = arith.constant 0 : i32
    return %arg0, %c0_i32, %c0_i32_0 : i32, i32, i32
  }
  func.func @transform_3(%arg0: i32) -> (i32, i32, i32) {
    %c0_i32 = arith.constant 0 : i32
    %c0_i32_0 = arith.constant 0 : i32
    %c0_i32_1 = arith.constant 0 : i32
    return %arg0, %c0_i32, %c0_i32_0 : i32, i32, i32
  }
  func.func @transform_4(%arg0: i32) -> (i32, i32) {
    %c0_i32 = arith.constant 0 : i32
    %c0_i32_0 = arith.constant 0 : i32
    %c0_i32_1 = arith.constant 0 : i32
    return %c0_i32, %c0_i32_0 : i32, i32
  }
  func.func @transform_5(%arg0: i32) -> (i32, i32) {
    %c0_i32 = arith.constant 0 : i32
    %c0_i32_0 = arith.constant 0 : i32
    %c0_i32_1 = arith.constant 0 : i32
    return %c0_i32, %c0_i32_0 : i32, i32
  }
  func.func @transform_6(%arg0: i32) -> (i32, i32) {
    %c0_i32 = arith.constant 0 : i32
    %c0_i32_0 = arith.constant 0 : i32
    %c0_i32_1 = arith.constant 0 : i32
    return %c0_i32, %c0_i32_0 : i32, i32
  }
  func.func @transform_7(%arg0: i32) -> (i32, i32) {
    %c0_i32 = arith.constant 0 : i32
    %c0_i32_0 = arith.constant 0 : i32
    %c0_i32_1 = arith.constant 0 : i32
    return %c0_i32, %c0_i32_0 : i32, i32
  }
  func.func @transform_8(%arg0: i32) -> (i32, i32, i32) {
    %c0_i32 = arith.constant 0 : i32
    %c0_i32_0 = arith.constant 0 : i32
    %c0_i32_1 = arith.constant 0 : i32
    return %arg0, %c0_i32, %c0_i32_0 : i32, i32, i32
  }
}

</mosaic_0001>

<bundles_post_ra>
// kernel: tpu_custom_call.1
= control target key start
LH: loop header
LB: loop body
LE: loop exit
PB: predicated region body
PF: predicated region fallthrough
CT: control target
= control target key end

     0   :  { %13 = vsyncpa [#allocation3], 0  ;;  %s1574_s0 = inlined_call_operand.vmem [shape: s32[128,1], index: 0, kind: input, shape index: {}]   ;;  %s1575_s1 = inlined_call_operand.vmem [shape: s32[128,1], index: 1, kind: input, shape index: {}]   ;;  %s1576_s2 = inlined_call_operand.vmem [shape: f32[8,16,1], index: 2, kind: input, shape index: {}]   ;;  %s1577_s3 = inlined_call_operand.vmem [shape: f32[8,16,16], index: 3, kind: input, shape index: {}]   ;;  %s1578_s4 = inlined_call_operand.vmem [shape: f32[128,128], index: 4, kind: input, shape index: {}]   ;;  %s1579_s5 = inlined_call_operand.vmem [shape: f32[16,128], index: 5, kind: input, shape index: {}]   ;;  %s1580_s6 = inlined_call_operand.vmem [shape: f32[16,1], index: 6, kind: input, shape index: {}]   ;;  %s1581_s7 = inlined_call_operand.vmem [shape: f32[1,128], index: 7, kind: input, shape index: {}]   ;;  %s1582_s8 = inlined_call_operand.hbm [shape: f32[8,16,128], index: 8, kind: output, shape index: {}]  }
   0x1   :  { %15 = vsyncpa [#allocation3 + $0x1], 0  ;;  %s1331_s27 = smov 0   ;;  %s1333_s28 = smov 0  }
   0x2   :  { %s1335_s29 = smov 0   ;;  %s1337_s30 = smov 0  }
   0x3 LB: > { %s1352_s9 = sadd.s32 4294967295, %s1275_s30   ;;  %s992_s10 = sadd.s32 4294967294, %s1275_s30   ;;  %s1275_s30 = sphi %s1337_s30, %s1588_s30   ;;  %s1271_s29 = sphi %s1335_s29, %s1587_s29   ;;  %s1267_s28 = sphi %s1333_s28, %s1586_s28   ;;  %s1263_s27 = sphi %s1331_s27, %s1585_s27  }
   0x4   : > { %s1356_s11 = sadd.s32 1, %s1275_s30   ;;  %s216_s12 = sadd.s32 1, %s1271_s29 }
   0x5   : > { %s213_s13 = ssub.s32 %s1275_s30, %s1356_s11  ;;  %p226_p0 = scmp.ne.s32.totalorder %s1271_s29, %s1267_s28 }
   0x6   : > { %p214_p1 = scmp.eq.s32.totalorder %s213_s13, 0  ;;  %p227_p2 = scmp.eq.s32.totalorder %s1352_s9, 1 }
   0x7   : > { %p232_p3 = scmp.ne.s32.totalorder %s1267_s28, %s1263_s27  ;;  %p233_p4 = scmp.eq.s32.totalorder %s992_s10, 1 }
   0x8   : > { %s1367_s14 = scalar_select %p214_p1, %s1271_s29, %s216_s12  }
   0x9   : > { %p1369_p5 = por %p227_p2, %p226_p0  ;;  %p1373_p6 = por %p233_p4, %p232_p3 }
   0xa   : > { %p995_p7 = scmp.ge.s32.totalorder %s1275_s30, 1  ;;  %p301_p8 = scmp.lt.s32.totalorder %s1275_s30, 3 }
   0xc   : > { %p302_p9 = pnand %p995_p7, %p301_p8 }
   0xd   : > { %v614_v0 = vld [vmem:[%s1580_s6] sm:$0xff] (!%p302_p9)  ;;  %s997_s19 = sshll.u32 (!%p302_p9), %s1352_s9, 3  ;;  %v1277_v2 = vmov (!%p302_p9), 0   ;;  %v486_v3 = vld [vmem:[%s1578_s4 + $0x8] sm:$0xff] (!%p302_p9)  ;;  %v487_v4 = vld [vmem:[%s1578_s4 + $0x10] sm:$0xff] (!%p302_p9)  ;;  %s1001_s13 = sshll.u32 (!%p302_p9), %s1352_s9, 2 }
   0xe   : > { %305 = sbr.rel (%p302_p9) target bundleno = 417 (0x1a1), region = 52  ;;  %v485_v1 = vld [vmem:[%s1578_s4] sm:$0xff] (!%p302_p9)  ;;  %1211 = vset.pattern.permute.xlu0 (!%p302_p9), %v1277_v2  ;;  %1212 = vset.pattern.permute.xlu1 (!%p302_p9), %v1277_v2  ;;  %p353_p10 = scmp.lt.s32.totalorder (!%p302_p9), %s997_s19, 15  ;;  %v488_v5 = vld [vmem:[%s1578_s4 + $0x18] sm:$0xff] (!%p302_p9)  ;;  %v615_v8 = vld [vmem:[%s1580_s6 + $0x8] sm:$0xff] (!%p302_p9)  ;;  %v1278_v42 = vmov (!%p302_p9), 0.0|0.0  }
   0xf   : > { %618 = vperm.xlu0 (!%p302_p9), %1211, %v614_v0   ;;  %v1113_v6 = vpack.c.bf16 (!%p302_p9), %v486_v3, %v485_v1  ;;  %v1117_v7 = vpack.c.bf16 (!%p302_p9), %v488_v5, %v487_v4  ;;  %v489_v9 = vld [vmem:[%s1578_s4 + $0x20] sm:$0xff] (!%p302_p9)  ;;  %v490_v10 = vld [vmem:[%s1578_s4 + $0x28] sm:$0xff] (!%p302_p9)  ;;  %v491_v12 = vld [vmem:[%s1578_s4 + $0x30] sm:$0xff] (!%p302_p9)  ;;  %p365_p11 = scmp.lt.s32.totalorder (!%p302_p9), %s1001_s13, 7  ;;  %vm634_vm0 = vcmask (!%p302_p9), 130048   ;;  %v395_v1 = vlaneseq (!%p302_p9) }
  0x10   : > { %v1121_v11 = vpack.c.bf16 (!%p302_p9), %v490_v10, %v489_v9  ;;  %v492_v15 = vld [vmem:[%s1578_s4 + $0x38] sm:$0xff] (!%p302_p9)  ;;  %v493_v19 = vld [vmem:[%s1578_s4 + $0x40] sm:$0xff] (!%p302_p9)  ;;  %v494_v20 = vld [vmem:[%s1578_s4 + $0x48] sm:$0xff] (!%p302_p9)  ;;  %vm1280_vm7 = vmmov (!%p302_p9), 0   ;;  %vm684_vm10 = vcmask (!%p302_p9), 1041409   ;;  %vm686_vm12 = vcmask (!%p302_p9), 1042434  }
  0x11   : > { %1148 = vmatprep.subr.bf16.mxu1 (!%p302_p9), %v1113_v6  ;;  %1114 = vmatprep.subr.bf16.mxu0 (!%p302_p9), %v1113_v6  ;;  %v1125_v17 = vpack.c.bf16 (!%p302_p9), %v492_v15, %v491_v12  ;;  %v1129_v22 = vpack.c.bf16 (!%p302_p9), %v494_v20, %v493_v19  ;;  %v495_v24 = vld [vmem:[%s1578_s4 + $0x50] sm:$0xff] (!%p302_p9)  ;;  %v496_v25 = vld [vmem:[%s1578_s4 + $0x58] sm:$0xff] (!%p302_p9)  ;;  %v497_v29 = vld [vmem:[%s1578_s4 + $0x60] sm:$0xff] (!%p302_p9)  ;;  %vm688_vm13 = vcmask (!%p302_p9), 1043459  }
  0x12   : > { %1156 = vmatpush3.bf16.msra.mxu1 (!%p302_p9), %v1113_v6  ;;  %1116 = vmatpush3.bf16.msra.mxu0 (!%p302_p9), %v1113_v6  ;;  %v1133_v27 = vpack.c.bf16 (!%p302_p9), %v496_v25, %v495_v24  ;;  %v498_v30 = vld [vmem:[%s1578_s4 + $0x68] sm:$0xff] (!%p302_p9)  ;;  %v499_v34 = vld [vmem:[%s1578_s4 + $0x70] sm:$0xff] (!%p302_p9)  ;;  %v500_v35 = vld [vmem:[%s1578_s4 + $0x78] sm:$0xff] (!%p302_p9) }
  0x13   : > { %623 = vperm.xlu0 (!%p302_p9), %1211, %v615_v8   ;;  %1149 = vmatprep.subr.bf16.mxu1 (!%p302_p9), %v1117_v7  ;;  %v1137_v32 = vpack.c.bf16 (!%p302_p9), %v498_v30, %v497_v29  ;;  %v1141_v37 = vpack.c.bf16 (!%p302_p9), %v500_v35, %v499_v34  ;;  %v1279_v34 = vmov (!%p302_p9), 1.0  }
  0x14   : > { %1118 = vmatprep.subr.bf16.mxu0 (!%p302_p9), %v1117_v7 }
  0x15   : > { %s1590_s19 = smov (!%p353_p10, %s997_s19), 15  ;;  %s1592_s13 = smov (!%p365_p11, %s1001_s13), 7 }
  0x16   : > { %s998_s22 = sshll.u32 %s1590_s19, 3  ;;  %1157 = vmatpush3.bf16.msra.mxu1 %v1117_v7  ;;  %1120 = vmatpush3.bf16.msra.mxu0 %v1117_v7  ;;  %s1031_s10 = sshll.u32 %s1592_s13, 4 }
  0x17   : > { %s1407_s25 = scalar_lea.vmem %s1574_s0, %s998_s22  ;;  %s1412_s12 = scalar_lea.vmem %s1575_s1, %s998_s22  ;;  %1150 = vmatprep.subr.bf16.mxu1 %v1121_v11  ;;  %1122 = vmatprep.subr.bf16.mxu0 %v1121_v11 }
  0x18   : > { %v385_v13 = vld [vmem:[%s1407_s25 + $0x30] sm:$0xff]  ;;  %v386_v14 = vld [vmem:[%s1407_s25 + $0x38] sm:$0xff]  ;;  %v379_v18 = vld [vmem:[%s1407_s25] sm:$0xff]  ;;  %s369_s18 = scalar_lea.vmem %s1576_s2, %s1031_s10  ;;  %s376_s20 = scalar_lea.vmem %s1577_s3, %s1031_s10 }
  0x19   : > { %416 = vperm.xlu1 %1212, %v385_v13   ;;  %v393_v16 = vld [vmem:[%s1412_s12 + $0x30] sm:$0xff]  ;;  %419 = vperm.xlu0 %1211, %v386_v14   ;;  %v394_v21 = vld [vmem:[%s1412_s12 + $0x38] sm:$0xff]  ;;  %v380_v23 = vld [vmem:[%s1407_s25 + $0x8] sm:$0xff]  ;;  %s349_s10 = sand.u32 1, %s1267_s28   ;;  %s1283_s22 = smov [#allocation2]  }
  0x1a   : > { %1158 = vmatpush3.bf16.msra.mxu1 %v1121_v11  ;;  %1124 = vmatpush3.bf16.msra.mxu0 %v1121_v11  ;;  %v387_v26 = vld [vmem:[%s1412_s12] sm:$0xff]  ;;  %v381_v28 = vld [vmem:[%s1407_s25 + $0x10] sm:$0xff]  ;;  %v388_v31 = vld [vmem:[%s1412_s12 + $0x8] sm:$0xff]  ;;  %v1479_v11 = vand.u32 127, %v395_v1  ;;  %s996_s19 = sshll.u32 %s349_s10, 6  ;;  %s1217_s23 = sshll.u32 %s1283_s22, 4  ;;  %s1218_s23 = int_to_ptr.vmem [resolvable:$false] %s1217_s23 }
  0x1b   : > { %1151 = vmatprep.subr.bf16.mxu1 %v1125_v17  ;;  %1126 = vmatprep.subr.bf16.mxu0 %v1125_v17  ;;  %v382_v33 = vld [vmem:[%s1407_s25 + $0x18] sm:$0xff]  ;;  %v389_v36 = vld [vmem:[%s1412_s12 + $0x10] sm:$0xff]  ;;  %v383_v38 = vld [vmem:[%s1407_s25 + $0x20] sm:$0xff]  ;;  %s351_s17 = scalar_lea.vmem [#allocation2], %s996_s19  ;;  %s1219_s24 = scalar_lea.vmem %s1218_s23, 2048 }
  0x1c   : > { %v390_v39 = vld [vmem:[%s1412_s12 + $0x18] sm:$0xff]  ;;  %v384_v40 = vld [vmem:[%s1407_s25 + $0x28] sm:$0xff]  ;;  %v391_v41 = vld [vmem:[%s1412_s12 + $0x20] sm:$0xff]  ;;  %s894_s25 = sshll.u32 %s351_s17, 4  ;;  %s1529_s25 = int_to_ptr.vmem [resolvable:$true] %s894_s25 }
  0x1d   : > { %448 = vperm.xlu1 %1212, %v393_v16   ;;  %398 = vperm.xlu0 %1211, %v379_v18   ;;  %v762_v43 = vld [vmem:[%s369_s18] sm:$0xff]  ;;  %v392_v44 = vld [vmem:[%s1412_s12 + $0x28] sm:$0xff]  ;;  %v764_v45 = vld [vmem:[%s369_s18 + $0x10] sm:$0xff]  ;;  %s1213_s21 = scalar_lea.vmem %s1529_s25, 1024  ;;  %p1220_p1 = scmp.lt.s32.totalorder %s1529_s25, %s1218_s23 }
  0x1e   : > { %1159 = vmatpush3.bf16.msra.mxu1 %v1125_v17  ;;  %1128 = vmatpush3.bf16.msra.mxu0 %v1125_v17  ;;  %v763_v46 = vld [vmem:[%s369_s18 + $0x8] sm:$0xff]  ;;  %v766_v47 = vld [vmem:[%s369_s18 + $0x20] sm:$0xff]  ;;  %v765_v48 = vld [vmem:[%s369_s18 + $0x18] sm:$0xff]  ;;  %p1214_p12 = scmp.ne.s32.totalorder %s1529_s25, %s1213_s21  ;;  %p1221_p2 = scmp.lt.s32.totalorder %s1219_s24, %s1213_s21 }
  0x1f   : > { %1152 = vmatprep.subr.bf16.mxu1 %v1129_v22  ;;  %1130 = vmatprep.subr.bf16.mxu0 %v1129_v22  ;;  %v768_v49 = vld [vmem:[%s369_s18 + $0x30] sm:$0xff]  ;;  %v767_v50 = vld [vmem:[%s369_s18 + $0x28] sm:$0xff]  ;;  %v769_v51 = vld [vmem:[%s369_s18 + $0x38] sm:$0xff]  ;;  %s1034_s18 = sshll.u32 %s1352_s9, 10  ;;  %s1533_s9 = scalar_lea.sflag [#allocation3], %s349_s10 }
  0x20   : > { %v606_v52 = vld [vmem:[%s376_s20] sm:$0xff]  ;;  %v608_v53 = vld [vmem:[%s376_s20 + $0x10] sm:$0xff]  ;;  %v607_v61 = vld [vmem:[%s376_s20 + $0x8] sm:$0xff]  ;;  %s1527_s13 = scalar_lea.hbm %s1582_s8, %s1034_s18  ;;  %p1215_p13 = pnand %p1214_p12, %p1369_p5 }
  0x21   : > { %451 = vperm.xlu1 %1212, %v394_v21   ;;  %401 = vperm.xlu0 %1211, %v380_v23   ;;  %v610_v54 = vld [vmem:[%s376_s20 + $0x20] sm:$0xff]  ;;  %v612_v55 = vld [vmem:[%s376_s20 + $0x30] sm:$0xff]  ;;  %v609_v62 = vld [vmem:[%s376_s20 + $0x18] sm:$0xff]  ;;  %p1222_p3 = por %p1221_p2, %p1220_p1 }
  0x22   : > { %1160 = vmatpush3.bf16.msra.mxu1 %v1129_v22  ;;  %1132 = vmatpush3.bf16.msra.mxu0 %v1129_v22  ;;  %v611_v63 = vld [vmem:[%s376_s20 + $0x28] sm:$0xff]  ;;  %v613_v0 = vld [vmem:[%s376_s20 + $0x38] sm:$0xff]  ;;  %p1216_p0 = pneg %p1215_p13 }
  0x23   : > { %1153 = vmatprep.subr.bf16.mxu1 %v1133_v27  ;;  %1134 = vmatprep.subr.bf16.mxu0 %v1133_v27 }
  0x24   : > { %p1223_p4 = pnand %p1222_p3, %p1216_p0 }
  0x25   : > { %430 = vperm.xlu1 %1212, %v387_v26   ;;  %404 = vperm.xlu0 %1211, %v381_v28   ;;  %v672_v28 = vld [vmem:[%s1579_s5 + $0x8] sm:$0xff] }
  0x26   : > { %1161 = vmatpush3.bf16.msra.mxu1 %v1133_v27  ;;  %1136 = vmatpush3.bf16.msra.mxu0 %v1133_v27  ;;  %v671_v27 = vld [vmem:[%s1579_s5] sm:$0xff] }
  0x27   : > { %1154 = vmatprep.subr.bf16.mxu1 %v1137_v32  ;;  %1138 = vmatprep.subr.bf16.mxu0 %v1137_v32  ;;  %v1146_v35 = vpack.c.bf16 %v672_v28, %v671_v27 }
  0x29   : > { %433 = vperm.xlu1 %1212, %v388_v31   ;;  %407 = vperm.xlu0 %1211, %v382_v33  }
  0x2a   : > { %1162 = vmatpush3.bf16.msra.mxu1 %v1137_v32  ;;  %1140 = vmatpush3.bf16.msra.mxu0 %v1137_v32 }
  0x2b   : > { %1155 = vmatprep.subr.bf16.mxu1 %v1141_v37  ;;  %1142 = vmatprep.subr.bf16.mxu0 %v1141_v37 }
  0x2d   : > { %436 = vperm.xlu1 %1212, %v389_v36   ;;  %410 = vperm.xlu0 %1211, %v383_v38  }
  0x2e   : > { %1163 = vmatpush3.bf16.msra.mxu1 %v1141_v37  ;;  %1144 = vmatpush3.bf16.msra.mxu0 %v1141_v37 }
  0x2f   : > { %1145 = vmatprep.subr.bf16.mxu1 %v1278_v42 }
  0x31   : > { %439 = vperm.xlu1 %1212, %v390_v39   ;;  %413 = vperm.xlu0 %1211, %v384_v40  }
  0x35   : > { %442 = vperm.xlu1 %1212, %v391_v41   ;;  %797 = vperm.xlu0 %1211, %v762_v43  }
  0x39   : > { %445 = vperm.xlu1 %1212, %v392_v44   ;;  %807 = vperm.xlu0 %1211, %v764_v45  }
  0x3d   : > { %802 = vperm.xlu1 %1212, %v763_v46   ;;  %817 = vperm.xlu0 %1211, %v766_v47  }
  0x41   : > { %812 = vperm.xlu1 %1212, %v765_v48   ;;  %827 = vperm.xlu0 %1211, %v768_v49   ;;  %v1281_v49 = vmov 0.0  }
  0x45   : > { %822 = vperm.xlu1 %1212, %v767_v50  }
  0x49   : > { %832 = vperm.xlu1 %1212, %v769_v51  }
  0x8e   : > { %v619_v56 = vpop.permute.xlu0 %618 }
  0x8f   : > { %v626_v57 = vmul.f32 %v619_v56, %v606_v52  ;;  %v628_v58 = vmul.f32 %v619_v56, %v608_v53  ;;  %v630_v59 = vmul.f32 %v619_v56, %v610_v54  ;;  %v632_v60 = vmul.f32 %v619_v56, %v612_v55 }
  0x91   : > { %v635_v2 = vsel %vm634_vm0, %v626_v57, 0.0  ;;  %v644_v3 = vsel %vm634_vm0, %v628_v58, 0.0  ;;  %v653_v4 = vsel %vm634_vm0, %v630_v59, 0.0  ;;  %v662_v5 = vsel %vm634_vm0, %v632_v60, 0.0 }
  0x92   : > { %v624_v6 = vpop.permute.xlu0 %623 }
  0x93   : > { %v627_v7 = vmul.f32 %v624_v6, %v607_v61  ;;  %v629_v8 = vmul.f32 %v624_v6, %v609_v62  ;;  %v631_v9 = vmul.f32 %v624_v6, %v611_v63  ;;  %v633_v10 = vmul.f32 %v624_v6, %v613_v0 }
  0x95   : > { %v636_v13 = vsel %vm634_vm0, %v627_v7, 0.0  ;;  %v645_v14 = vsel %vm634_vm0, %v629_v8, 0.0  ;;  %v654_v15 = vsel %vm634_vm0, %v631_v9, 0.0  ;;  %v663_v16 = vsel %vm634_vm0, %v633_v10, 0.0 }
  0x96   : > { %v637_v17 = vadd.f32 %v636_v13, %v635_v2  ;;  %v646_v18 = vadd.f32 %v645_v14, %v644_v3  ;;  %v655_v19 = vadd.f32 %v654_v15, %v653_v4  ;;  %v664_v20 = vadd.f32 %v663_v16, %v662_v5  ;;  %v1023_v14 = vld [vmem:[%s1581_s7] ss:$0 sm:$0xff] }
  0x97   : > { %v1282_v5 = vmov 1966171168   ;;  %v775_v13 = vshrl.u32 %v395_v1, 7 }
  0x98   : > { %v417_v12 = vpop.permute.xlu1 %416  ;;  %v420_v21 = vpop.permute.xlu0 %419  ;;  %v638_v22 = vrot.slane %v637_v17, 4  ;;  %v647_v23 = vrot.slane %v646_v18, 4  ;;  %v656_v24 = vrot.slane %v655_v19, 4  ;;  %v665_v25 = vrot.slane %v664_v20, 4 }
  0x99   : > { %vm427_vm1 = vcmp.eq.s32.totalorder %v417_v12, %v1479_v11  ;;  %vm428_vm4 = vcmp.eq.s32.totalorder %v420_v21, %v1479_v11  ;;  %v772_v6 = vunpack.c.l.s4 %v1282_v5 }
  0x9a   : > { %v639_v29 = vadd.f32 %v638_v22, %v637_v17  ;;  %v648_v30 = vadd.f32 %v647_v23, %v646_v18  ;;  %v657_v31 = vadd.f32 %v656_v24, %v655_v19  ;;  %v666_v32 = vadd.f32 %v665_v25, %v664_v20 }
  0x9b   : > { %v773_v12 = vunpack.c.0.s8 %v772_v6  ;;  %v837_v23 = vsub.s32 0, %v775_v13 }
  0x9c   : > { %v449_v26 = vpop.permute.xlu1 %448  ;;  %v399_v33 = vpop.permute.xlu0 %398  ;;  %v640_v36 = vrot.slane %v639_v29, 2  ;;  %v649_v37 = vrot.slane %v648_v30, 2  ;;  %v658_v38 = vrot.slane %v657_v31, 2  ;;  %v667_v39 = vrot.slane %v666_v32, 2 }
  0x9d   : > { %vm459_vm2 = vcmp.eq.s32.totalorder %v449_v26, %v1479_v11  ;;  %vm421_vm8 = vcmp.eq.s32.totalorder %v399_v33, %v1479_v11  ;;  %v776_v16 = vsub.s32 %v773_v12, %v775_v13 }
  0x9e   : > { %vm467_vm3 = vmor %vm427_vm1, %vm459_vm2  ;;  %v641_v41 = vadd.f32 %v640_v36, %v639_v29  ;;  %v650_v42 = vadd.f32 %v649_v37, %v648_v30  ;;  %v659_v43 = vadd.f32 %v658_v38, %v657_v31  ;;  %v668_v45 = vadd.f32 %v667_v39, %v666_v32 }
  0x9f   : > { %1103 = vmatprep.mubr.msk.f32.mxu1 %vm467_vm3, %v1279_v34 }
  0xa0   : > { %v452_v40 = vpop.permute.xlu1 %451  ;;  %v402_v44 = vpop.permute.xlu0 %401  ;;  %v642_v46 = vrot.slane %v641_v41, 1  ;;  %v651_v47 = vrot.slane %v650_v42, 1  ;;  %v660_v50 = vrot.slane %v659_v43, 1  ;;  %v669_v51 = vrot.slane %v668_v45, 1 }
  0xa1   : > { %vm460_vm5 = vcmp.eq.s32.totalorder %v452_v40, %v1479_v11  ;;  %vm422_vm14 = vcmp.eq.s32.totalorder %v402_v44, %v1479_v11 }
  0xa2   : > { %vm468_vm6 = vmor %vm428_vm4, %vm460_vm5  ;;  %v643_v53 = vadd.f32 %v642_v46, %v641_v41  ;;  %v652_v54 = vadd.f32 %v651_v47, %v650_v42  ;;  %v661_v55 = vadd.f32 %v660_v50, %v659_v43  ;;  %v670_v57 = vadd.f32 %v669_v51, %v668_v45 }
  0xa3   : > { %1104 = vmatmul.mubr.msk.f32.vlgmr.msra.gmra.mrb[0].mxu1 %vm468_vm6, %v1279_v34 }
  0xa4   : > { %v431_v48 = vpop.permute.xlu1 %430  ;;  %1147 = vmatpush3.bf16.msra.mxu1 %v1146_v35  ;;  %1110 = vmatprep.mubr.msk.f32.mxu1 %vm1280_vm7, %v1281_v49  ;;  %v405_v52 = vpop.permute.xlu0 %404  ;;  %v685_v58 = vsel %vm684_vm10, %v652_v54, %v643_v53 }
  0xa5   : > { %vm453_vm9 = vcmp.eq.s32.totalorder %v431_v48, %v1479_v11  ;;  %v687_v59 = vsel %vm686_vm12, %v661_v55, %v685_v58  ;;  %vm423_vm2 = vcmp.eq.s32.totalorder %v405_v52, %v1479_v11 }
  0xa6   : > { %vm461_vm11 = vmor %vm421_vm8, %vm453_vm9  ;;  %v689_v61 = vsel %vm688_vm13, %v670_v57, %v687_v59 }
  0xa7   : > { %1094 = vmatprep.mubr.msk.f32.mxu0 %vm461_vm11, %v1279_v34  ;;  %1111 = vmatmul.mubr.msk.f32.vlgmr.msra.gmra.mrb[2].mxu1 %vm634_vm0, %v689_v61 }
  0xa8   : > { %v434_v56 = vpop.permute.xlu1 %433  ;;  %v408_v60 = vpop.permute.xlu0 %407 }
  0xa9   : > { %vm454_vm15 = vcmp.eq.s32.totalorder %v434_v56, %v1479_v11  ;;  %vm424_vm5 = vcmp.eq.s32.totalorder %v408_v60, %v1479_v11 }
  0xaa   : > { %vm462_vm1 = vmor %vm422_vm14, %vm454_vm15 }
  0xab   : > { %1095 = vmatmul.mubr.msk.f32.vlgmr.msra.gmra.mrb[0].mxu0 %vm462_vm1, %v1279_v34 }
  0xac   : > { %v437_v62 = vpop.permute.xlu1 %436  ;;  %v411_v63 = vpop.permute.xlu0 %410 }
  0xad   : > { %vm455_vm3 = vcmp.eq.s32.totalorder %v437_v62, %v1479_v11  ;;  %vm425_vm0 = vcmp.eq.s32.totalorder %v411_v63, %v1479_v11 }
  0xae   : > { %vm463_vm4 = vmor %vm423_vm2, %vm455_vm3 }
  0xaf   : > { %1097 = vmatprep.mubr.msk.f32.mxu0 %vm463_vm4, %v1279_v34 }
  0xb0   : > { %v440_v0 = vpop.permute.xlu1 %439  ;;  %v414_v3 = vpop.permute.xlu0 %413 }
  0xb1   : > { %vm456_vm6 = vcmp.eq.s32.totalorder %v440_v0, %v1479_v11  ;;  %vm426_vm10 = vcmp.eq.s32.totalorder %v414_v3, %v1479_v11 }
  0xb2   : > { %vm464_vm7 = vmor %vm424_vm5, %vm456_vm6 }
  0xb3   : > { %1098 = vmatmul.mubr.msk.f32.gmra.mrb[2].mxu0 %vm464_vm7, %v1279_v34 }
  0xb4   : > { %v443_v2 = vpop.permute.xlu1 %442  ;;  %v798_v7 = vpop.permute.xlu0 %797 }
  0xb5   : > { %vm457_vm8 = vcmp.eq.s32.totalorder %v443_v2, %v1479_v11 }
  0xb6   : > { %vm465_vm9 = vmor %vm425_vm0, %vm457_vm8 }
  0xb7   : > { %1100 = vmatprep.mubr.msk.f32.mxu0 %vm465_vm9, %v1279_v34 }
  0xb8   : > { %v446_v4 = vpop.permute.xlu1 %445  ;;  %v808_v15 = vpop.permute.xlu0 %807 }
  0xb9   : > { %vm458_vm11 = vcmp.eq.s32.totalorder %v446_v4, %v1479_v11 }
  0xba   : > { %vm466_vm12 = vmor %vm426_vm10, %vm458_vm11 }
  0xbb   : > { %1101 = vmatmul.mubr.msk.f32.gmra.mrb[4].mxu0 %vm466_vm12, %v1279_v34 }
  0xbc   : > { %v803_v9 = vpop.permute.xlu1 %802  ;;  %v818_v26 = vpop.permute.xlu0 %817 }
  0xc0   : > { %v813_v11 = vpop.permute.xlu1 %812  ;;  %v828_v41 = vpop.permute.xlu0 %827 }
  0xc4   : > { %v823_v1 = vpop.permute.xlu1 %822 }
  0xc8   : > { %v833_v42 = vpop.permute.xlu1 %832 }
 0x176   : > { %v1105_v8 = vpop.f32.mrb[0].mxu1 }
 0x177   : > { %v597_v10 = vpop.f32.mrb[1].mxu1 }
 0x17a   : > { %v758_v18 = vpop.f32.mrb[2].mxu1 }
 0x17b   : > { %v759_v19 = vadd.f32 %v1023_v14, %v758_v18  ;;  %v1112_v21 = vpop.f32.mrb[3].mxu1 }
 0x17d   : > { %v777_v22 = vrot.slane %v759_v19, %v776_v16 }
 0x17e   : > { %v1096_v17 = vpop.f32.mrb[0].mxu0 }
 0x17f   : > { %v567_v20 = vpop.f32.mrb[1].mxu0  ;;  %v778_v24 = vcombine.high %v777_v22, %v777_v22  ;;  %v785_v25 = vrot.slane %v777_v22, %v776_v16 }
 0x181   : > { %v838_v27 = vrot.slane %v785_v25, %v837_v23  ;;  %v792_v28 = vrot.slane %v778_v24, %v776_v16  ;;  %v793_v29 = vcombine.high %v785_v25, %v785_v25 }
 0x183   : > { %v855_v31 = vmul.f32 %v838_v27, %v798_v7  ;;  %v856_v32 = vmul.f32 %v838_v27, %v803_v9  ;;  %v794_v33 = vcombine.high %v792_v28, %v792_v28  ;;  %v842_v34 = vrot.slane %v792_v28, %v837_v23 }
 0x184   : > { %v846_v36 = vrot.slane %v793_v29, %v837_v23 }
 0x185   : > { %v863_v37 = vadd.f32 %v855_v31, %v567_v20  ;;  %v864_v38 = vadd.f32 %v1096_v17, %v856_v32  ;;  %v850_v39 = vrot.slane %v794_v33, %v837_v23  ;;  %v858_v40 = vmul.f32 %v842_v34, %v813_v11 }
 0x186   : > { %v1099_v30 = vpop.f32.mrb[2].mxu0  ;;  %v857_v43 = vmul.f32 %v842_v34, %v808_v15  ;;  %v860_v50 = vmul.f32 %v846_v36, %v823_v1  ;;  %v859_v52 = vmul.f32 %v846_v36, %v818_v26 }
 0x187   : > { %v577_v35 = vpop.f32.mrb[3].mxu0  ;;  %871 = vst [vmem:[%s351_s17] sm:$0xff] %v863_v37  ;;  %872 = vst [vmem:[%s351_s17 + $0x8] sm:$0xff] %v864_v38  ;;  %v861_v44 = vmul.f32 %v850_v39, %v828_v41  ;;  %v862_v45 = vmul.f32 %v850_v39, %v833_v42  ;;  %v866_v46 = vadd.f32 %v1099_v30, %v858_v40 }
 0x188   : > { %v865_v47 = vadd.f32 %v857_v43, %v577_v35 }
 0x189   : > { %v869_v48 = vadd.f32 %v861_v44, %v597_v10  ;;  %v870_v49 = vadd.f32 %v1105_v8, %v862_v45  ;;  %874 = vst [vmem:[%s351_s17 + $0x18] sm:$0xff] %v866_v46 }
 0x18a   : > { %873 = vst [vmem:[%s351_s17 + $0x10] sm:$0xff] %v865_v47 }
 0x18b   : > { %877 = vst [vmem:[%s351_s17 + $0x30] sm:$0xff] %v869_v48  ;;  %878 = vst [vmem:[%s351_s17 + $0x38] sm:$0xff] %v870_v49 }
 0x18e   : > { %v1102_v51 = vpop.f32.mrb[4].mxu0 }
 0x18f   : > { %v868_v53 = vadd.f32 %v1102_v51, %v860_v50  ;;  %v587_v54 = vpop.f32.mrb[5].mxu0 }
 0x190   : > { %v867_v55 = vadd.f32 %v859_v52, %v587_v54 }
 0x191   : > { %876 = vst [vmem:[%s351_s17 + $0x28] sm:$0xff] %v868_v53 }
 0x192   : > { %875 = vst [vmem:[%s351_s17 + $0x20] sm:$0xff] %v867_v55 }
 0x193   : > { %1226 = shalt.err (!%p1223_p4)
}
 0x194   : > { %s1227_s26 = scalar_lea.hbm %s1527_s13, 1024  ;;  %s1231_s17 = scalar_lea.hbm %s1582_s8, 2048 }
 0x195   : > { %p1228_p7 = scmp.ne.s32.totalorder %s1527_s13, %s1227_s26  ;;  %p1232_p10 = scmp.lt.u32.totalorder %s1527_s13, %s1582_s8 }
 0x196   : > { %p1233_p11 = scmp.lt.u32.totalorder %s1231_s17, %s1227_s26  ;;  %p1235_p13 = scmp.lt.u32.totalorder %s1227_s26, %s1527_s13 }
 0x197   : > { %p1229_p8 = pnand %p1228_p7, %p1369_p5 }
 0x198   : > { %p1234_p12 = por %p1233_p11, %p1232_p10 }
 0x199   : > { %p1230_p9 = pneg %p1229_p8 }
 0x19a   : > { %p1236_p0 = por %p1235_p13, %p1234_p12 }
 0x19c   : > { %p1237_p1 = pnand %p1236_p0, %p1230_p9 }
 0x19e   : > { %1240 = shalt.err (!%p1237_p1)
}
 0x19f   : > { %s1284_s20 = smov 128   ;;  %s1285_s21 = smov 8  }
 0x1a0   : > { %1164 = dma.vmem_to_hbm [thread:$0]  (%p1369_p5), %s1529_s25, 1024, %s1527_s13, %s1533_s9, %s1284_s20, %s1284_s20, %s1285_s21  }
 0x1a1 PF: > { %p1170_p2 = scmp.ge.s32.totalorder %s1275_s30, 2  ;;  %s909_s22 = sand.u32 1, %s1263_s27  }
 0x1a2   : > { %s910_s23 = scalar_lea.sflag [#allocation3], %s909_s22 }
 0x1a3   : > { %p1167_p3 = pnand %p1170_p2, %p1373_p6 }
 0x1a5   : > { %1258 = dma.done.wait (!%p1167_p3), %s910_s23, 1024  }
 0x1a6   : > { %1260 = vsyncadd (!%p1167_p3), %s910_s23, 4294966272  ;;  %p18_p4 = scmp.ge.s32.totalorder %s1356_s11, 4   ;;  %s1585_s27 = smov %s1267_s28 }
 0x1a7   : > { %s1586_s28 = smov %s1271_s29  ;;  %s1587_s29 = smov %s1367_s14 }
 0x1a8   : > { %s1588_s30 = smov %s1356_s11  ;;  %20 = sbr.rel (!%p18_p4) target bundleno = 3 (0x3), region = 96 }
 0x1af   :  { %915 = vsyncpa [#allocation3], 1 }
 0x1b0   :  { %917 = vsyncpa [#allocation3 + $0x1], 1 }

</bundles_post_ra>
